<compile_context>
chip_gen: v7x
topology: tpu7x:2x2x1
jax: 0.10.0
libtpu: 0.0.40
codegen_flags: <defaults>
</compile_context>

<pallas_src>
import functools

import jax
import jax.numpy as jnp
from jax.experimental import pallas as pl
from jax.experimental.pallas import tpu as pltpu

_LANES = 128


def channel_attention_kernel(x_ref, w1_ref, w2_ref, o_ref, acc_sum, acc_max,
                             *, s_total, s_tile, chunk_unroll=8):
    # x_ref:   (1, C, s_tile)  one spatial slab of one batch element
    # w1_ref:  (Ch, C)         fc1 weight (1x1x1 conv == matmul)
    # w2_ref:  (C, Ch)         fc2 weight
    # o_ref:   (1, C, 1)       sigmoid gate for this batch element
    # acc_sum: (C, 128) f32    running sum accumulator (VMEM scratch)
    # acc_max: (C, 128) f32    running max accumulator (VMEM scratch)
    C = x_ref.shape[1]
    s_idx = pl.program_id(1)
    last_s = pl.num_programs(1) - 1

    num_full = s_tile // _LANES        # full 128-lane chunks per tile
    rem = s_tile % _LANES              # >0 only when s_tile == S (single S step)
    tail_masked = (s_total % s_tile) != 0   # last grid tile overruns S

    @pl.when(s_idx == 0)
    def _init():
        acc_sum[...] = jnp.zeros_like(acc_sum)
        acc_max[...] = jnp.full_like(acc_max, -jnp.inf)

    def tile_reduce(masked):
        # Partial sum/max over this tile, carried as (C, 128) f32 values (vregs)
        # across the chunk loop -> scratch RMW happens once per grid step.
        # (For very large C the compiler spills the carry to VMEM, gracefully
        #  degrading back to scratch-like behaviour.)
        init = (jnp.zeros((C, _LANES), jnp.float32),
                jnp.full((C, _LANES), -jnp.inf, jnp.float32))
        if masked:
            lane = jax.lax.broadcasted_iota(jnp.int32, (C, _LANES), 1)
            base = s_idx * s_tile

        def step(off, carry):
            ps, pm = carry
            chunk = x_ref[0, :, pl.ds(off, _LANES)].astype(jnp.float32)
            if masked:
                valid = (base + off + lane) < s_total
                ps = ps + jnp.where(valid, chunk, 0.0)
                pm = jnp.maximum(pm, jnp.where(valid, chunk, -jnp.inf))
            else:
                ps = ps + chunk
                pm = jnp.maximum(pm, chunk)
            return ps, pm

        if num_full <= chunk_unroll:
            carry = init
            for c in range(num_full):          # short, fully unrolled static loop
                carry = step(c * _LANES, carry)
            return carry
        return jax.lax.fori_loop(
            0, num_full,
            lambda c, carry: step(pl.multiple_of(c * _LANES, _LANES), carry),
            init, unroll=chunk_unroll)

    if num_full > 0:
        if tail_masked:
            # Runtime-gate the mask: only the final S step pays iota/cmp/select.
            @pl.when(s_idx != last_s)
            def _clean_steps():
                ps, pm = tile_reduce(masked=False)
                acc_sum[...] += ps
                acc_max[...] = jnp.maximum(acc_max[...], pm)

            @pl.when(s_idx == last_s)
            def _masked_step():
                ps, pm = tile_reduce(masked=True)
                acc_sum[...] += ps
                acc_max[...] = jnp.maximum(acc_max[...], pm)
        else:
            ps, pm = tile_reduce(masked=False)
            acc_sum[...] += ps
            acc_max[...] = jnp.maximum(acc_max[...], pm)

    @pl.when(s_idx == last_s)
    def _finalize():
        # One cross-lane (XLU) reduce per batch element; mean via precomputed 1/S.
        total_sum = jnp.sum(acc_sum[...], axis=1, keepdims=True)    # (C, 1)
        total_max = jnp.max(acc_max[...], axis=1, keepdims=True)    # (C, 1)
        if rem:
            # Remainder lanes of a single full-extent tile (s_tile == S, S % 128 != 0).
            tail = x_ref[0, :, num_full * _LANES:].astype(jnp.float32)  # (C, rem)
            total_sum = total_sum + jnp.sum(tail, axis=1, keepdims=True)
            total_max = jnp.maximum(total_max,
                                    jnp.max(tail, axis=1, keepdims=True))

        avg = total_sum * jnp.float32(1.0 / s_total)
        pooled = jnp.concatenate([avg, total_max], axis=1)           # (C, 2)

        w1 = w1_ref[...].astype(jnp.float32)                         # (Ch, C)
        w2 = w2_ref[...].astype(jnp.float32)                         # (C, Ch)
        # Fused width-2 MLP: one fc1 + one fc2 matmul covers both pooled paths.
        h = jnp.maximum(jnp.dot(w1, pooled, preferred_element_type=jnp.float32), 0.0)
        y = jnp.dot(w2, h, preferred_element_type=jnp.float32)       # (C, 2)
        attn = jax.nn.sigmoid(y[:, 0:1] + y[:, 1:2])                 # (C, 1)
        o_ref[0] = attn.astype(o_ref.dtype)


def _vmem_config():
    """(x-slab byte budget, vmem_limit_bytes), generation-aware."""
    try:
        cap = int(pltpu.get_tpu_info().vmem_capacity_bytes)
    except Exception:
        cap = 64 * 1024 * 1024                 # be conservative (v7x-sized VMEM)
    if cap >= 96 * 1024 * 1024:                # v5e / v6e: 128 MiB physical VMEM
        return 12 * 1024 * 1024, 64 * 1024 * 1024
    return 6 * 1024 * 1024, 32 * 1024 * 1024   # v7x: 64 MiB physical VMEM


def _pick_s_tile(S, C, itemsize, slab_bytes):
    """Largest streaming tile (in lanes) under the slab budget, preferring a
    multiple-of-128 tile that divides S exactly (no masked tail / partial DMA)."""
    if S <= _LANES:
        return S
    max_lanes = max(_LANES, (slab_bytes // (C * itemsize)) // _LANES * _LANES)
    if S <= max_lanes:
        return S                # single step; any sub-128 remainder handled statically
    if S % _LANES != 0:
        return max_lanes        # stream multiples of 128; mask only the last tile
    cap_blocks = min(max_lanes, S) // _LANES
    s_blocks = S // _LANES
    for blocks in range(cap_blocks, max(cap_blocks // 2, 0), -1):
        if s_blocks % blocks == 0:
            return blocks * _LANES      # exact divisor: no masked tail
    return cap_blocks * _LANES          # fall back to the (runtime-gated) masked tail


def channel_attention(x, w_fc1, w_fc2, *, s_tile=None):
    """x: (N, C, D, H, W); w_fc1: (C//16, C); w_fc2: (C, C//16).

    Returns (N, C, 1, 1, 1), matching the PyTorch module output.
    """
    N, C, D, H, W = x.shape
    Ch, C_in = w_fc1.shape
    assert C_in == C and w_fc2.shape == (C, Ch)
    S = D * H * W
    x_flat = x.reshape(N, C, S)

    slab_bytes, vmem_limit = _vmem_config()
    if s_tile is None:
        s_tile = _pick_s_tile(S, C, x.dtype.itemsize, slab_bytes)
    s_tile = min(s_tile, S)
    if s_tile != S and s_tile % _LANES != 0:
        raise ValueError("s_tile must be a multiple of 128 or cover all of S")
    num_s = pl.cdiv(S, s_tile)

    kernel = functools.partial(channel_attention_kernel, s_total=S, s_tile=s_tile)

    cost = pl.CostEstimate(
        flops=int(3 * N * C * S + 8 * N * Ch * C),
        transcendentals=int(N * C),
        bytes_accessed=int(x_flat.size * x.dtype.itemsize
                           + w_fc1.size * w_fc1.dtype.itemsize
                           + w_fc2.size * w_fc2.dtype.itemsize
                           + N * C * x.dtype.itemsize),
    )

    # TODO(synk): for N == 1 inference on v7x, split the S axis across the two
    # TensorCores (two partial accumulators combined in finalize) so the second
    # core does not idle; v5e/v6e are single-TC so this grid is already optimal.
    out = pl.pallas_call(
        kernel,
        out_shape=jax.ShapeDtypeStruct((N, C, 1), x.dtype),
        grid_spec=pltpu.PrefetchScalarGridSpec(
            num_scalar_prefetch=0,
            grid=(N, num_s),
            in_specs=[
                # Multi-MiB streaming slab of x; default double-buffering is the
                # right depth for this DMA-bound loop (triple-buffering such
                # slabs would only burn VMEM, especially on v7x).
                pl.BlockSpec((1, C, s_tile), lambda n, s: (n, 0, s)),
                pl.BlockSpec((Ch, C), lambda n, s: (0, 0)),
                pl.BlockSpec((C, Ch), lambda n, s: (0, 0)),
            ],
            out_specs=pl.BlockSpec((1, C, 1), lambda n, s: (n, 0, 0)),
            scratch_shapes=[
                pltpu.VMEM((C, _LANES), jnp.float32),   # running sum
                pltpu.VMEM((C, _LANES), jnp.float32),   # running max
            ],
        ),
        compiler_params=pltpu.CompilerParams(
            dimension_semantics=("parallel", "arbitrary"),
            vmem_limit_bytes=vmem_limit,
        ),
        cost_estimate=cost,
    )(x_flat, w_fc1, w_fc2)

    return out.reshape(N, C, 1, 1, 1)


def _reference(x, w_fc1, w_fc2):
    # Pure-JAX reference mirroring the PyTorch forward.
    avg = jnp.mean(x, axis=(2, 3, 4))                      # (N, C)
    mx = jnp.max(x, axis=(2, 3, 4))                        # (N, C)

    def mlp(v):
        return jnp.maximum(v @ w_fc1.T, 0.0) @ w_fc2.T

    out = jax.nn.sigmoid(mlp(avg) + mlp(mx))
    return out.reshape(*out.shape, 1, 1, 1)


if __name__ == "__main__":
    key = jax.random.PRNGKey(0)
    kx, k1, k2 = jax.random.split(key, 3)

    N, C = 2, 32                 # in_planes must be >= 16 (hidden = C // 16)
    Ch = C // 16
    w_fc1 = jax.random.normal(k1, (Ch, C), dtype=jnp.float32) * 0.1
    w_fc2 = jax.random.normal(k2, (C, Ch), dtype=jnp.float32) * 0.1

    cases = [
        # (spatial shape, explicit s_tile): exercise the auto single-slab path,
        # the partially-unrolled fori_loop chunk walk, multi-step streaming with
        # an exact-divisor tile, the runtime-gated masked tail, and the
        # sub-128-lane remainder path.
        ((4, 8, 8), None),     # S = 256  -> auto: one full slab, 2 static chunks
        ((8, 16, 16), None),   # S = 2048 -> auto: one slab, fori_loop (16 chunks)
        ((4, 16, 16), 256),    # S = 1024 -> 4 clean 256-lane steps (no mask)
        ((4, 8, 10), 128),     # S = 320  -> last 128-lane step masked (64 valid)
        ((4, 6, 6), None),     # S = 144  -> single slab, 16-lane remainder chunk
    ]
    for i, ((D, H, W), st) in enumerate(cases):
        x = jax.random.normal(jax.random.fold_in(kx, i), (N, C, D, H, W),
                              dtype=jnp.float32)
        out = jax.block_until_ready(channel_attention(x, w_fc1, w_fc2, s_tile=st))
        ref = _reference(x, w_fc1, w_fc2)
        assert out.shape == (N, C, 1, 1, 1), out.shape
        assert jnp.allclose(out, ref, atol=1e-5, rtol=1e-5), f"mismatch in case {i}"

    print("KERNEL_OK")
</pallas_src>

<mosaic_0001>
module attributes {stable_mosaic.version = 11 : i64} {
  func.func @channel_attention_kernel(%arg0: i32, %arg1: i32, %arg2: memref<1x32x256xf32, #tpu.memory_space<vmem>>, %arg3: memref<2x32xf32, #tpu.memory_space<vmem>>, %arg4: memref<32x2xf32, #tpu.memory_space<vmem>>, %arg5: memref<1x32x1xf32, #tpu.memory_space<vmem>>, %arg6: memref<32x128xf32, #tpu.memory_space<vmem>>, %arg7: memref<32x128xf32, #tpu.memory_space<vmem>>) attributes {dimension_semantics = [#tpu.dimension_semantics<parallel>, #tpu.dimension_semantics<arbitrary>], iteration_bounds = array<i64: 2, 1>, scalar_prefetch = 0 : i64, scratch_operands = 2 : i64, tpu.core_type = #tpu.core_type<tc>, window_params = [{transform_indices = @transform_0, window_bounds = array<i64: 1, 32, 256>}, {pipeline_mode = #tpu.pipeline_mode<synchronous>, transform_indices = @transform_1, window_bounds = array<i64: 2, 32>}, {pipeline_mode = #tpu.pipeline_mode<synchronous>, transform_indices = @transform_2, window_bounds = array<i64: 32, 2>}, {transform_indices = @transform_3, window_bounds = array<i64: 1, 32, 1>}]} {
    %c0_i32 = arith.constant 0 : i32
    %0 = arith.cmpi eq, %arg1, %c0_i32 : i32
    %1 = arith.extui %0 : i1 to i32
    %c0_i32_0 = arith.constant 0 : i32
    %2 = arith.cmpi ne, %1, %c0_i32_0 : i32
    scf.if %2 {
      %cst_16 = arith.constant 0.000000e+00 : f32
      %22 = vector.broadcast %cst_16 : f32 to vector<32x128xf32>
      %c0_17 = arith.constant 0 : index
      %c0_18 = arith.constant 0 : index
      %23 = vector.load %arg6[%c0_17, %c0_18] : memref<32x128xf32, #tpu.memory_space<vmem>>, vector<32x128xf32>
      tpu.vector_store %arg6[%c0_17, %c0_18], %22 {strides = array<i32>} : memref<32x128xf32, #tpu.memory_space<vmem>>, vector<32x128xf32>,
      %cst_19 = arith.constant 0xFF800000 : f32
      %24 = vector.broadcast %cst_19 : f32 to vector<32x128xf32>
      %c0_20 = arith.constant 0 : index
      %c0_21 = arith.constant 0 : index
      %25 = vector.load %arg7[%c0_20, %c0_21] : memref<32x128xf32, #tpu.memory_space<vmem>>, vector<32x128xf32>
      tpu.vector_store %arg7[%c0_20, %c0_21], %24 {strides = array<i32>} : memref<32x128xf32, #tpu.memory_space<vmem>>, vector<32x128xf32>,
    } else {
    }
    %cst = arith.constant 0.000000e+00 : f32
    %3 = vector.broadcast %cst : f32 to vector<32x128xf32>
    %cst_1 = arith.constant 0xFF800000 : f32
    %4 = vector.broadcast %cst_1 : f32 to vector<32x128xf32>
    %c0 = arith.constant 0 : index
    %c0_2 = arith.constant 0 : index
    %c0_3 = arith.constant 0 : index
    %5 = vector.load %arg2[%c0, %c0_2, %c0_3] : memref<1x32x256xf32, #tpu.memory_space<vmem>>, vector<1x32x128xf32>
    %6 = vector.shape_cast %5 : vector<1x32x128xf32> to vector<32x128xf32>
    %7 = arith.addf %3, %6 : vector<32x128xf32>
    %8 = arith.maximumf %4, %6 : vector<32x128xf32>
    %c0_4 = arith.constant 0 : index
    %c0_5 = arith.constant 0 : index
    %c128 = arith.constant 128 : index
    %9 = vector.load %arg2[%c0_4, %c0_5, %c128] : memref<1x32x256xf32, #tpu.memory_space<vmem>>, vector<1x32x128xf32>
    %10 = vector.shape_cast %9 : vector<1x32x128xf32> to vector<32x128xf32>
    %11 = arith.addf %7, %10 : vector<32x128xf32>
    %12 = arith.maximumf %8, %10 : vector<32x128xf32>
    %c0_6 = arith.constant 0 : index
    %c0_7 = arith.constant 0 : index
    %13 = vector.load %arg6[%c0_6, %c0_7] : memref<32x128xf32, #tpu.memory_space<vmem>>, vector<32x128xf32>
    %14 = arith.addf %13, %11 : vector<32x128xf32>
    %c0_8 = arith.constant 0 : index
    %c0_9 = arith.constant 0 : index
    %15 = vector.load %arg6[%c0_8, %c0_9] : memref<32x128xf32, #tpu.memory_space<vmem>>, vector<32x128xf32>
    tpu.vector_store %arg6[%c0_8, %c0_9], %14 {strides = array<i32>} : memref<32x128xf32, #tpu.memory_space<vmem>>, vector<32x128xf32>,
    %c0_10 = arith.constant 0 : index
    %c0_11 = arith.constant 0 : index
    %16 = vector.load %arg7[%c0_10, %c0_11] : memref<32x128xf32, #tpu.memory_space<vmem>>, vector<32x128xf32>
    %17 = arith.maximumf %16, %12 : vector<32x128xf32>
    %c0_12 = arith.constant 0 : index
    %c0_13 = arith.constant 0 : index
    %18 = vector.load %arg7[%c0_12, %c0_13] : memref<32x128xf32, #tpu.memory_space<vmem>>, vector<32x128xf32>
    tpu.vector_store %arg7[%c0_12, %c0_13], %17 {strides = array<i32>} : memref<32x128xf32, #tpu.memory_space<vmem>>, vector<32x128xf32>,
    %c0_i32_14 = arith.constant 0 : i32
    %19 = arith.cmpi eq, %arg1, %c0_i32_14 : i32
    %20 = arith.extui %19 : i1 to i32
    %c0_i32_15 = arith.constant 0 : i32
    %21 = arith.cmpi ne, %20, %c0_i32_15 : i32
    scf.if %21 {
      %c0_16 = arith.constant 0 : index
      %c0_17 = arith.constant 0 : index
      %22 = vector.load %arg6[%c0_16, %c0_17] : memref<32x128xf32, #tpu.memory_space<vmem>>, vector<32x128xf32>
      %cst_18 = arith.constant dense<0.000000e+00> : vector<32xf32>
      %23 = vector.multi_reduction <add>, %22, %cst_18 [1] : vector<32x128xf32> to vector<32xf32>
      %24 = vector.shape_cast %23 : vector<32xf32> to vector<32x1xf32>
      %c0_19 = arith.constant 0 : index
      %c0_20 = arith.constant 0 : index
      %25 = vector.load %arg7[%c0_19, %c0_20] : memref<32x128xf32, #tpu.memory_space<vmem>>, vector<32x128xf32>
      %cst_21 = arith.constant dense<0xFF800000> : vector<32xf32>
      %26 = vector.multi_reduction <maximumf>, %25, %cst_21 [1] : vector<32x128xf32> to vector<32xf32>
      %27 = vector.shape_cast %26 : vector<32xf32> to vector<32x1xf32>
      %cst_22 = arith.constant 3.906250e-03 : f32
      %28 = vector.broadcast %cst_22 : f32 to vector<32x1xf32>
      %29 = arith.mulf %24, %28 : vector<32x1xf32>
      %30 = tpu.concatenate %29, %27 in 1 : vector<32x1xf32>, vector<32x1xf32> -> vector<32x2xf32>
      %c0_23 = arith.constant 0 : index
      %c0_24 = arith.constant 0 : index
      %31 = vector.load %arg3[%c0_23, %c0_24] : memref<2x32xf32, #tpu.memory_space<vmem>>, vector<2x32xf32>
      %c0_25 = arith.constant 0 : index
      %c0_26 = arith.constant 0 : index
      %32 = vector.load %arg4[%c0_25, %c0_26] : memref<32x2xf32, #tpu.memory_space<vmem>>, vector<32x2xf32>
      %cst_27 = arith.constant dense<0.000000e+00> : vector<2x2xf32>
      %33 = tpu.matmul %31, %30, %cst_27 {dimension_numbers = #tpu.dot_dimension_numbers<[1], [0], [0], [1], [0, 0, 1, 1], [], []>} : vector<2x32xf32>, vector<32x2xf32>, vector<2x2xf32> -> vector<2x2xf32>
      %cst_28 = arith.constant 0.000000e+00 : f32
      %34 = vector.broadcast %cst_28 : f32 to vector<2x2xf32>
      %35 = arith.maximumf %33, %34 : vector<2x2xf32>
      %cst_29 = arith.constant dense<0.000000e+00> : vector<32x2xf32>
      %36 = tpu.matmul %32, %35, %cst_29 {dimension_numbers = #tpu.dot_dimension_numbers<[1], [0], [0], [1], [0, 0, 1, 1], [], []>} : vector<32x2xf32>, vector<2x2xf32>, vector<32x2xf32> -> vector<32x2xf32>
      %37 = vector.extract_strided_slice %36 {offsets = [0, 0], sizes = [32, 1], strides = [1, 1]} : vector<32x2xf32> to vector<32x1xf32>
      %38 = vector.extract_strided_slice %36 {offsets = [0, 1], sizes = [32, 1], strides = [1, 1]} : vector<32x2xf32> to vector<32x1xf32>
      %39 = arith.addf %37, %38 : vector<32x1xf32>
      %40 = arith.negf %39 : vector<32x1xf32>
      %41 = math.exp %40 : vector<32x1xf32>
      %cst_30 = arith.constant 1.000000e+00 : f32
      %42 = vector.broadcast %cst_30 : f32 to vector<32x1xf32>
      %43 = arith.addf %42, %41 : vector<32x1xf32>
      %44 = arith.divf %42, %43 : vector<32x1xf32>
      %c0_31 = arith.constant 0 : index
      %c0_32 = arith.constant 0 : index
      %c0_33 = arith.constant 0 : index
      %45 = vector.load %arg5[%c0_31, %c0_32, %c0_33] : memref<1x32x1xf32, #tpu.memory_space<vmem>>, vector<1x32x1xf32>
      %46 = vector.shape_cast %45 : vector<1x32x1xf32> to vector<32x1xf32>
      %47 = vector.shape_cast %44 : vector<32x1xf32> to vector<1x32x1xf32>
      tpu.vector_store %arg5[%c0_31, %c0_32, %c0_33], %47 {strides = array<i32>} : memref<1x32x1xf32, #tpu.memory_space<vmem>>, vector<1x32x1xf32>,
    } else {
    }
    return
  }
  func.func @transform_0(%arg0: i32, %arg1: i32) -> (i32, i32, i32) {
    %c0_i32 = arith.constant 0 : i32
    %c0_i32_0 = arith.constant 0 : i32
    return %arg0, %c0_i32, %arg1 : i32, i32, i32
  }
  func.func @transform_1(%arg0: i32, %arg1: i32) -> (i32, i32) {
    %c0_i32 = arith.constant 0 : i32
    %c0_i32_0 = arith.constant 0 : i32
    %c0_i32_1 = arith.constant 0 : i32
    return %c0_i32, %c0_i32_0 : i32, i32
  }
  func.func @transform_2(%arg0: i32, %arg1: i32) -> (i32, i32) {
    %c0_i32 = arith.constant 0 : i32
    %c0_i32_0 = arith.constant 0 : i32
    %c0_i32_1 = arith.constant 0 : i32
    return %c0_i32, %c0_i32_0 : i32, i32
  }
  func.func @transform_3(%arg0: i32, %arg1: i32) -> (i32, i32, i32) {
    %c0_i32 = arith.constant 0 : i32
    %c0_i32_0 = arith.constant 0 : i32
    %c0_i32_1 = arith.constant 0 : i32
    return %arg0, %c0_i32, %c0_i32_0 : i32, i32, i32
  }
}

</mosaic_0001>

<bundles_post_ra>
// kernel: tpu_custom_call.1
= control target key start
LH: loop header
LB: loop body
LE: loop exit
PB: predicated region body
PF: predicated region fallthrough
CT: control target
= control target key end

     0   :  { %8 = vsyncpa [#allocation5], 0  ;;  %s1001_s0 = inlined_call_operand.hbm [shape: f32[2,32,256], index: 0, kind: input, shape index: {}]   ;;  %s1002_s1 = inlined_call_operand.vmem [shape: f32[2,32], index: 1, kind: input, shape index: {}]   ;;  %s1003_s2 = inlined_call_operand.vmem [shape: f32[32,2], index: 2, kind: input, shape index: {}]   ;;  %s1004_s3 = inlined_call_operand.vmem [shape: f32[2,32,1], index: 3, kind: output, shape index: {}]  }
   0x1   :  { %10 = vsyncpa [#allocation5 + $0x1], 0  ;;  %s854_s12 = smov 0   ;;  %s856_s13 = smov 0  }
   0x2   :  { %s858_s14 = smov 0   ;;  %s860_s15 = smov 0  }
   0x3   :  { %s862_s16 = smov 0   ;;  %s864_s17 = smov 0  }
   0x4 LB: > { %s608_s18 = sadd.s32 4294967295, %s825_s17   ;;  %s28_s19 = sadd.s32 1, %s821_s16  ;;  %s825_s17 = sphi %s864_s17, %s16_s17   ;;  %s821_s16 = sphi %s862_s16, %s1012_s16   ;;  %s817_s15 = sphi %s860_s15, %s1011_s15   ;;  %s813_s14 = sphi %s858_s14, %s1010_s14   ;;  %s809_s13 = sphi %s856_s13, %s1009_s13   ;;  %s805_s12 = sphi %s854_s12, %s1008_s12  }
   0x5   : > { %p30_p0 = scmp.ge.s32.totalorder %s28_s19, 2  ;;  %s37_s20 = sadd.s32 1, %s813_s14 }
   0x6   : > { %p44_p1 = scmp.ne.s32.totalorder %s813_s14, %s809_s13  ;;  %p45_p2 = scmp.eq.s32.totalorder %s825_s17, 0 }
   0x7   : > { %s1014_s19 = smov (%p30_p0, %s28_s19), 0  ;;  %p50_p4 = scmp.ne.s32.totalorder %s809_s13, %s805_s12 }
   0x8   : > { %p890_p3 = por %p45_p2, %p44_p1  ;;  %s32_s22 = ssub.s32 %s821_s16, %s1014_s19 }
   0x9   : > { %p51_p5 = scmp.eq.s32.totalorder %s608_s18, 0  ;;  %p35_p6 = scmp.eq.s32.totalorder %s32_s22, 0 }
   0xa   : > { %p674_p8 = scmp.lt.s32.totalorder %s825_s17, 2  ;;  %s148_s25 = sand.u32 1, %s813_s14  }
   0xb   : > { %p897_p7 = por %p51_p5, %p50_p4  ;;  %s631_s26 = sshll.u32 %s821_s16, 10 }
   0xc   : > { %s903_s24 = scalar_select %p35_p6, %s813_s14, %s37_s20  }
   0xd   : > { %s612_s27 = sshll.u32 %s148_s25, 6  ;;  %s910_s30 = scalar_lea.hbm %s1001_s0, %s631_s26 }
   0xe   : > { %s152_s4 = scalar_lea.vmem [#allocation4], %s612_s27  ;;  %p914_p9 = pnand %p674_p8, %p890_p3 }
   0xf   : > { %s161_s5 = sshll.u32 %s152_s4, 4  ;;  %s920_s7 = scalar_lea.sflag [#allocation5], %s148_s25  ;;  %s918_s5 = int_to_ptr.vmem [resolvable:$true] %s161_s5 }
  0x10   : > { %s745_s8 = scalar_lea.hbm %s910_s30, 1024  ;;  %p747_p11 = pneg %p914_p9 }
  0x11   : > { %p746_p10 = scmp.ne.s32.totalorder %s910_s30, %s745_s8  ;;  %s750_s11 = scalar_lea.hbm %s1001_s0, 2048 }
  0x12   : > { %p751_p0 = scmp.lt.u32.totalorder %s910_s30, %s1001_s0  ;;  %p752_p1 = scmp.lt.u32.totalorder %s750_s11, %s745_s8 }
  0x13   : > { %p748_p12 = pnand %p747_p11, %p746_p10  ;;  %p754_p3 = scmp.lt.u32.totalorder %s745_s8, %s910_s30 }
  0x14   : > { %p753_p2 = por %p752_p1, %p751_p0 }
  0x15   : > { %p749_p13 = pneg %p748_p12 }
  0x16   : > { %p755_p4 = por %p754_p3, %p753_p2 }
  0x18   : > { %p756_p5 = pnand %p755_p4, %p749_p13 }
  0x1a   : > { %759 = shalt.err (!%p756_p5)
}
  0x1b   : > { %s760_s20 = scalar_lea.vmem %s918_s5, 1024  ;;  %s827_s21 = smov [#allocation4]  }
  0x1c   : > { %p761_p6 = scmp.ne.s32.totalorder %s918_s5, %s760_s20  ;;  %s765_s22 = sshll.u32 %s827_s21, 4  ;;  %s766_s22 = int_to_ptr.vmem [resolvable:$false] %s765_s22 }
  0x1d   : > { %s767_s25 = scalar_lea.vmem %s766_s22, 2048  ;;  %p768_p12 = scmp.lt.s32.totalorder %s918_s5, %s766_s22 }
  0x1e   : > { %p763_p8 = pnand %p761_p6, %p747_p11  ;;  %p769_p0 = scmp.lt.s32.totalorder %s767_s25, %s760_s20 }
  0x20   : > { %p764_p10 = pneg %p763_p8  ;;  %p770_p1 = por %p769_p0, %p768_p12 }
  0x22   : > { %p771_p2 = pnand %p770_p1, %p764_p10 }
  0x24   : > { %774 = shalt.err (!%p771_p2)
}
  0x25   : > { %s828_s26 = smov 256   ;;  %s829_s27 = smov 16  }
  0x26   : > { %673 = dma.hbm_to_vmem [thread:$0]  (!%p914_p9), %s910_s30, 1024, %s918_s5, %s920_s7, %s828_s26, %s828_s26, %s829_s27  }
  0x27   : > { %p615_p11 = scmp.ge.s32.totalorder %s825_s17, 1  ;;  %p169_p13 = scmp.lt.s32.totalorder %s825_s17, 3 }
  0x29   : > { %p170_p3 = pnand %p615_p11, %p169_p13 }
  0x2a   : > { %s175_s28 = sand.u32 (!%p170_p3), 1, %s809_s13  }
  0x2b   : > { %173 = sbr.rel (%p170_p3) target bundleno = 795 (0x31b), region = 32  ;;  %s616_s29 = sshll.u32 (!%p170_p3), %s175_s28, 6 }
  0x2c   : > { %s176_s4 = scalar_lea.sflag (!%p170_p3), [#allocation5], %s175_s28  ;;  %s179_s8 = scalar_lea.vmem (!%p170_p3), [#allocation4], %s616_s29 }
  0x32   : > { %800 = dma.done.wait (%p897_p7), %s176_s4, 1024  }
  0x33   : > { %802 = vsyncadd (%p897_p7), %s176_s4, 4294966272  ;;  %v220_v0 = vld [vmem:[%s179_s8] sm:$0xff]  ;;  %v228_v1 = vld [vmem:[%s179_s8 + $0x8] sm:$0xff]  ;;  %v830_v16 = vmov 0.0|0.0   ;;  %vm831_vm0 = vmmov 0   ;;  %v832_v17 = vmov 0.0  }
  0x34   : > { %v221_v2 = vld [vmem:[%s179_s8 + $0x10] sm:$0xff]  ;;  %v236_v3 = vmax.f32 %v220_v0, %v228_v1  ;;  %v232_v4 = vadd.f32 %v228_v1, %v220_v0  ;;  %v229_v5 = vld [vmem:[%s179_s8 + $0x18] sm:$0xff]  ;;  %v222_v10 = vld [vmem:[%s179_s8 + $0x20] sm:$0xff]  ;;  %662 = vmatprep.subr.bf16.mxu0 %v830_v16  ;;  %651 = vmatprep.mubr.msk.f32.mxu0 %vm831_vm0, %v832_v17  ;;  %vm295_vm1 = vcmask 7168   ;;  %vm305_vm2 = vcmask 261120   ;;  %s833_s20 = smov 127  }
  0x35   : > { %v237_v6 = vmax.f32 %v221_v2, %v229_v5  ;;  %v233_v7 = vadd.f32 %v229_v5, %v221_v2  ;;  %v223_v8 = vld [vmem:[%s179_s8 + $0x30] sm:$0xff]  ;;  %v231_v9 = vld [vmem:[%s179_s8 + $0x38] sm:$0xff]  ;;  %v230_v11 = vld [vmem:[%s179_s8 + $0x28] sm:$0xff]  ;;  %vm380_vm3 = vcmask 15360   ;;  %vm393_vm4 = vcmask 1041408   ;;  %p203_p7 = scmp.lt.s32.totalorder %s817_s15, 1 }
  0x36   : > { %283 = vmax.xlane.f32.xlu1 %v236_v3  ;;  %271 = vadd.xlane.f32.xlu0 %v232_v4  ;;  %v235_v12 = vadd.f32 %v231_v9, %v223_v8  ;;  %v234_v13 = vadd.f32 %v230_v11, %v222_v10  ;;  %v239_v14 = vmax.f32 %v223_v8, %v231_v9  ;;  %v300_v36 = vld [vmem:[%s1002_s1] sm:$0x3]  ;;  %v302_v41 = vld [vmem:[%s1003_s2 + $0x8] sm:$0xff]  ;;  %v303_v42 = vld [vmem:[%s1003_s2 + $0x10] sm:$0xff] }
  0x37   : > { %v238_v15 = vmax.f32 %v222_v10, %v230_v11  ;;  %v301_v37 = vld [vmem:[%s1003_s2] sm:$0xff]  ;;  %v304_v43 = vld [vmem:[%s1003_s2 + $0x18] sm:$0xff]  ;;  %s1016_s15 = smov (!%p203_p7, %s817_s15), 1 }
  0x38   : > { %656 = vmatprep.mubr.msk.f32.mxu1 %vm380_vm3, %v301_v37  ;;  %s632_s21 = sshll.u32 %s1016_s15, 5 }
  0x39   : > { %s207_s26 = scalar_lea.vmem %s1004_s3, %s632_s21 }
  0x3a   : > { %285 = vmax.xlane.f32.xlu1 %v237_v6  ;;  %273 = vadd.xlane.f32.xlu0 %v233_v7 }
  0x3e   : > { %277 = vadd.xlane.f32.xlu1 %v235_v12  ;;  %275 = vadd.xlane.f32.xlu0 %v234_v13 }
  0x42   : > { %289 = vmax.xlane.f32.xlu1 %v239_v14  ;;  %287 = vmax.xlane.f32.xlu0 %v238_v15 }
  0xc3   : > { %v284_v18 = vpop.xlane.xlu1 %283  ;;  %v272_v19 = vpop.xlane.xlu0 %271 }
  0xc4   : > { %v291_v20 = vmul.f32 0.00390625, %v272_v19 }
  0xc6   : > { %v296_v24 = vsel %vm295_vm1, %v291_v20, %v284_v18 }
  0xc7   : > { %v286_v21 = vpop.xlane.xlu1 %285  ;;  %v274_v22 = vpop.xlane.xlu0 %273 }
  0xc8   : > { %v292_v23 = vmul.f32 0.00390625, %v274_v22 }
  0xca   : > { %v297_v25 = vsel %vm295_vm1, %v292_v23, %v286_v21 }
  0xcb   : > { %v278_v26 = vpop.xlane.xlu1 %277  ;;  %v276_v27 = vpop.xlane.xlu0 %275  ;;  %v663_v28 = vpack.c.bf16 %v297_v25, %v296_v24 }
  0xcc   : > { %v294_v29 = vmul.f32 0.00390625, %v278_v26  ;;  %v293_v30 = vmul.f32 0.00390625, %v276_v27 }
  0xcd   : > { %664 = vmatpush3.bf16.msra.mxu0 %v663_v28 }
  0xce   : > { %665 = vmatprep.subr.bf16.mxu0 %v830_v16 }
  0xcf   : > { %v290_v31 = vpop.xlane.xlu1 %289  ;;  %v288_v32 = vpop.xlane.xlu0 %287 }
  0xd0   : > { %v299_v33 = vsel %vm295_vm1, %v294_v29, %v290_v31  ;;  %v298_v34 = vsel %vm295_vm1, %v293_v30, %v288_v32 }
  0xd1   : > { %v666_v35 = vpack.c.bf16 %v299_v33, %v298_v34 }
  0xd3   : > { %667 = vmatpush3.bf16.msra.mxu0 %v666_v35 }
  0xd6   : > { %652 = vmatmul.mubr.msk.f32.vlgmr.msra.gmra.mrb[0].mxu0 %vm305_vm2, %v300_v36 }
 0x1a9   : > { %v375_v38 = vpop.f32.mrb[0].mxu0 }
 0x1aa   : > { %v379_v39 = vmax.f32 %v375_v38, 0.0  ;;  %v653_v40 = vpop.f32.mrb[1].mxu0 }
 0x1ac   : > { %654 = vmatprep.subr.msk.mxu1 %vm393_vm4, %v379_v39 }
 0x1ad   : > { %655 = vmatpush3.msk.msra.mxu1 %vm393_vm4, %v379_v39 }
 0x1ae   : > { %657 = vmatmul.mubr.msk.f32.vlgmr.msra.gmra.mrb[0].mxu1 %vm380_vm3, %v302_v41 }
 0x1af   : > { %659 = vmatprep.mubr.msk.f32.mxu1 %vm380_vm3, %v303_v42 }
 0x1b2   : > { %660 = vmatmul.mubr.msk.f32.gmra.mrb[2].mxu1 %vm380_vm3, %v304_v43 }
 0x281   : > { %v658_v44 = vpop.f32.mrb[0].mxu1 }
 0x282   : > { %488 = vrot.lane.b32.xlu1 %v658_v44, %s833_s20  ;;  %v463_v45 = vpop.f32.mrb[1].mxu1 }
 0x283   : > { %486 = vrot.lane.b32.xlu0 %v463_v45, %s833_s20 }
 0x285   : > { %v661_v46 = vpop.f32.mrb[2].mxu1 }
 0x286   : > { %v473_v47 = vpop.f32.mrb[3].mxu1 }
 0x287   : > { %490 = vrot.lane.b32.xlu1 %v473_v47, %s833_s20 }
 0x28b   : > { %492 = vrot.lane.b32.xlu1 %v661_v46, %s833_s20 }
 0x2f4   : > { %v489_v48 = vpop.permute.xlu1 %488 }
 0x2f5   : > { %v499_v49 = vadd.f32 %v658_v44, %v489_v48  ;;  %v487_v50 = vpop.permute.xlu0 %486 }
 0x2f6   : > { %v498_v51 = vadd.f32 %v487_v50, %v463_v45 }
 0x2f7   : > { %v626_v52 = vmul.f32 -1.442695, %v499_v49 }
 0x2f8   : > { %v625_v53 = vmul.f32 -1.442695, %v498_v51 }
 0x2f9   : > { %729 = vpow2.f32 %v626_v52  ;;  %v491_v54 = vpop.permute.xlu1 %490 }
 0x2fa   : > { %731 = vpow2.f32 %v625_v53  ;;  %v500_v55 = vadd.f32 %v491_v54, %v473_v47 }
 0x2fc   : > { %v627_v56 = vmul.f32 -1.442695, %v500_v55 }
 0x2fd   : > { %v493_v57 = vpop.permute.xlu1 %492 }
 0x2fe   : > { %733 = vpow2.f32 %v627_v56  ;;  %v501_v58 = vadd.f32 %v661_v46, %v493_v57 }
 0x300   : > { %v628_v59 = vmul.f32 -1.442695, %v501_v58 }
 0x302   : > { %735 = vpow2.f32 %v628_v59 }
 0x303   : > { %v730_v60 = vpop.eup %729 }
 0x304   : > { %v732_v61 = vpop.eup %731  ;;  %v515_v62 = vadd.f32 1.0, %v730_v60 }
 0x305   : > { %v514_v63 = vadd.f32 1.0, %v732_v61 }
 0x306   : > { %737 = vrcp.f32 %v515_v62 }
 0x307   : > { %739 = vrcp.f32 %v514_v63 }
 0x308   : > { %v734_v0 = vpop.eup %733 }
 0x309   : > { %v516_v1 = vadd.f32 1.0, %v734_v0 }
 0x30b   : > { %741 = vrcp.f32 %v516_v1 }
 0x30c   : > { %v736_v2 = vpop.eup %735 }
 0x30d   : > { %v517_v3 = vadd.f32 1.0, %v736_v2 }
 0x30f   : > { %743 = vrcp.f32 %v517_v3 }
 0x310   : > { %v738_v4 = vpop.eup %737 }
 0x311   : > { %v740_v5 = vpop.eup %739  ;;  %527 = vst.msk [vmem:[%s207_s26 + $0x8] sm:$0xff] %vm295_vm1, %v738_v4 }
 0x312   : > { %526 = vst.msk [vmem:[%s207_s26] sm:$0xff] %vm295_vm1, %v740_v5 }
 0x315   : > { %v742_v6 = vpop.eup %741 }
 0x316   : > { %528 = vst.msk [vmem:[%s207_s26 + $0x10] sm:$0xff] %vm295_vm1, %v742_v6 }
 0x319   : > { %v744_v7 = vpop.eup %743 }
 0x31a   : > { %529 = vst.msk [vmem:[%s207_s26 + $0x18] sm:$0xff] %vm295_vm1, %v744_v7 }
 0x31b PF: > { %s16_s17 = sadd.s32 1, %s825_s17   ;;  %s1008_s12 = smov %s809_s13 }
 0x31c   : > { %p13_p9 = scmp.ge.s32.totalorder %s16_s17, 4   ;;  %s1009_s13 = smov %s813_s14 }
 0x31d   : > { %s1010_s14 = smov %s903_s24  ;;  %s1011_s15 = smov %s821_s16 }
 0x31e   : > { %s1012_s16 = smov %s1014_s19  ;;  %15 = sbr.rel (!%p13_p9) target bundleno = 4 (0x4), region = 80 }
 0x325   :  { %551 = vsyncpa [#allocation5], 1 }
 0x326   :  { %553 = vsyncpa [#allocation5 + $0x1], 1 }

</bundles_post_ra>
